<compile_context>
chip_gen: v7x
topology: tpu7x:2x2x1
jax: 0.10.0
libtpu: 0.0.40
codegen_flags: <defaults>
</compile_context>

<pallas_src>
import jax
import jax.numpy as jnp
from jax.experimental import pallas as pl
from jax.experimental.pallas import tpu as pltpu

_LANE = 128      # vreg lane width
_SUBLANE = 8     # vreg sublane count (f32)


def _round_up(n, m):
    return (n + m - 1) // m * m


def autoencoder_kernel(x_ref,
                       w1_ref, b1_ref,
                       w2_ref, b2_ref,
                       w3_ref, b3_ref,
                       w4_ref, b4_ref,
                       o_ref):
    """One batch tile (BM, D_pad) -> (BM, D_pad); all four matmuls + ReLUs fused."""
    x = x_ref[...]                                   # (BM, D_pad), compute dtype

    # encoder: Linear(D, 64) -> ReLU -> Linear(64, 32)   (f32 accumulation on MXU)
    h = jnp.dot(x, w1_ref[...], preferred_element_type=jnp.float32) + b1_ref[...]
    h = jnp.maximum(h, 0.0)
    z = jnp.dot(h.astype(w2_ref.dtype), w2_ref[...],
                preferred_element_type=jnp.float32) + b2_ref[...]

    # decoder: Linear(32, 64) -> ReLU -> Linear(64, D)
    d = jnp.dot(z.astype(w3_ref.dtype), w3_ref[...],
                preferred_element_type=jnp.float32) + b3_ref[...]
    d = jnp.maximum(d, 0.0)
    y = jnp.dot(d.astype(w4_ref.dtype), w4_ref[...],
                preferred_element_type=jnp.float32) + b4_ref[...]

    o_ref[...] = y.astype(o_ref.dtype)               # lane-dense (D_pad = k*128) store


def autoencoder_forward(x, params, *, block_m=1024, compute_dtype=jnp.float32):
    """x: (B, D) float32.  params: dict of (in, out) weights and (1, out) biases.

    compute_dtype=jnp.bfloat16 halves x/weight HBM traffic and uses the bf16 MXU
    rate on v6e/v7x (accumulation stays f32); default f32 matches PyTorch.
    """
    B, D = x.shape
    H1 = params["w1"].shape[1]      # 64
    C = params["w2"].shape[1]       # 32
    D_pad = _round_up(D, _LANE)     # lane-dense feature dim

    # Batch tile: big enough to fill the MXU / amortize per-step overhead, but
    # never larger than the (sublane-rounded) batch itself.
    BM = min(block_m, _round_up(B, _SUBLANE))
    B_pad = _round_up(B, BM)
    grid_m = B_pad // BM

    cd = compute_dtype
    f32 = jnp.float32

    # Zero-pad features to D_pad; zero rows of w1 / zero cols of w4, b4 keep the
    # padded lanes inert.  Padded batch rows are garbage and sliced off at the end.
    x_p = jnp.zeros((B_pad, D_pad), cd).at[:B, :D].set(x.astype(cd))
    w1 = jnp.zeros((D_pad, H1), cd).at[:D, :].set(params["w1"].astype(cd))
    w2 = params["w2"].astype(cd)
    w3 = params["w3"].astype(cd)
    w4 = jnp.zeros((H1, D_pad), cd).at[:, :D].set(params["w4"].astype(cd))
    b1 = params["b1"].astype(f32)
    b2 = params["b2"].astype(f32)
    b3 = params["b3"].astype(f32)
    b4 = jnp.zeros((1, D_pad), f32).at[:, :D].set(params["b4"].astype(f32))

    def resident(a):
        # Whole array, same block index every grid step -> stays resident in VMEM.
        return pl.BlockSpec(a.shape, lambda i: (0, 0))

    in_specs = [
        pl.BlockSpec((BM, D_pad), lambda i: (i, 0)),   # x: tiled over the batch
        resident(w1), resident(b1),
        resident(w2), resident(b2),
        resident(w3), resident(b3),
        resident(w4), resident(b4),
    ]
    out_spec = pl.BlockSpec((BM, D_pad), lambda i: (i, 0))

    flops = 2 * B_pad * (D_pad * H1 + H1 * C + C * H1 + H1 * D_pad)
    bytes_accessed = sum(int(a.size) * a.dtype.itemsize
                         for a in (x_p, w1, b1, w2, b2, w3, b3, w4, b4))
    bytes_accessed += B_pad * D_pad * jnp.dtype(x.dtype).itemsize  # output

    out_padded = pl.pallas_call(
        autoencoder_kernel,
        out_shape=jax.ShapeDtypeStruct((B_pad, D_pad), x.dtype),
        grid=(grid_m,),
        in_specs=in_specs,
        out_specs=out_spec,
        compiler_params=pltpu.CompilerParams(
            dimension_semantics=("parallel",),       # shard batch tiles across TCs (v7x)
            vmem_limit_bytes=32 * 1024 * 1024,       # explicit; tiles use ~4 MiB
        ),
        cost_estimate=pl.CostEstimate(
            flops=flops, transcendentals=0, bytes_accessed=bytes_accessed),
    )(x_p, w1, b1, w2, b2, w3, b3, w4, b4)

    return out_padded[:B, :D]


def init_params(key, d_in, hidden=64, code=32):
    """Deterministic PyTorch-style (uniform +/- 1/sqrt(fan_in)) init.
    Weights stored (in_features, out_features) so y = x @ W + b."""
    def linear(k, fan_in, fan_out):
        kw, kb = jax.random.split(k)
        bound = 1.0 / jnp.sqrt(jnp.float32(fan_in))
        w = jax.random.uniform(kw, (fan_in, fan_out), jnp.float32, -bound, bound)
        b = jax.random.uniform(kb, (1, fan_out), jnp.float32, -bound, bound)
        return w, b

    k1, k2, k3, k4 = jax.random.split(key, 4)
    w1, b1 = linear(k1, d_in, hidden)   # encoder Linear(D, 64)
    w2, b2 = linear(k2, hidden, code)   # encoder Linear(64, 32)
    w3, b3 = linear(k3, code, hidden)   # decoder Linear(32, 64)
    w4, b4 = linear(k4, hidden, d_in)   # decoder Linear(64, D)
    return dict(w1=w1, b1=b1, w2=w2, b2=b2, w3=w3, b3=b3, w4=w4, b4=b4)


def reference_forward(x, p):
    h = jnp.maximum(x @ p["w1"] + p["b1"], 0.0)
    z = h @ p["w2"] + p["b2"]
    d = jnp.maximum(z @ p["w3"] + p["b3"], 0.0)
    return d @ p["w4"] + p["b4"]


if __name__ == "__main__":
    key = jax.random.PRNGKey(0)
    kx, kp, kx2 = jax.random.split(key, 3)

    D = 16                                   # np.shape(df_combined)[1] == 16
    params = init_params(kp, D)

    # Small shape matching the original csv autoencoder: single-tile path.
    x_small = jax.random.normal(kx, (8, D), jnp.float32)
    out_small = jax.block_until_ready(autoencoder_forward(x_small, params))
    ref_small = reference_forward(x_small, params)
    assert out_small.shape == x_small.shape
    assert jnp.allclose(out_small, ref_small, atol=1e-5, rtol=1e-5)

    # Non-multiple batch: exercises the pipelined multi-tile grid + batch padding.
    x_big = jax.random.normal(kx2, (1541, D), jnp.float32)
    out_big = jax.block_until_ready(autoencoder_forward(x_big, params, block_m=512))
    ref_big = reference_forward(x_big, params)
    assert out_big.shape == x_big.shape
    assert jnp.allclose(out_big, ref_big, atol=1e-4, rtol=1e-4)

    print("KERNEL_OK")
</pallas_src>

<mosaic_0001>
module attributes {stable_mosaic.version = 11 : i64} {
  func.func @autoencoder_kernel(%arg0: i32, %arg1: memref<8x128xf32, #tpu.memory_space<vmem>>, %arg2: memref<128x64xf32, #tpu.memory_space<vmem>>, %arg3: memref<1x64xf32, #tpu.memory_space<vmem>>, %arg4: memref<64x32xf32, #tpu.memory_space<vmem>>, %arg5: memref<1x32xf32, #tpu.memory_space<vmem>>, %arg6: memref<32x64xf32, #tpu.memory_space<vmem>>, %arg7: memref<1x64xf32, #tpu.memory_space<vmem>>, %arg8: memref<64x128xf32, #tpu.memory_space<vmem>>, %arg9: memref<1x128xf32, #tpu.memory_space<vmem>>, %arg10: memref<8x128xf32, #tpu.memory_space<vmem>>) attributes {dimension_semantics = [#tpu.dimension_semantics<parallel>], iteration_bounds = array<i64: 1>, scalar_prefetch = 0 : i64, scratch_operands = 0 : i64, tpu.core_type = #tpu.core_type<tc>, window_params = [{transform_indices = @transform_0, window_bounds = array<i64: 8, 128>}, {pipeline_mode = #tpu.pipeline_mode<synchronous>, transform_indices = @transform_1, window_bounds = array<i64: 128, 64>}, {pipeline_mode = #tpu.pipeline_mode<synchronous>, transform_indices = @transform_2, window_bounds = array<i64: 1, 64>}, {pipeline_mode = #tpu.pipeline_mode<synchronous>, transform_indices = @transform_3, window_bounds = array<i64: 64, 32>}, {pipeline_mode = #tpu.pipeline_mode<synchronous>, transform_indices = @transform_4, window_bounds = array<i64: 1, 32>}, {pipeline_mode = #tpu.pipeline_mode<synchronous>, transform_indices = @transform_5, window_bounds = array<i64: 32, 64>}, {pipeline_mode = #tpu.pipeline_mode<synchronous>, transform_indices = @transform_6, window_bounds = array<i64: 1, 64>}, {pipeline_mode = #tpu.pipeline_mode<synchronous>, transform_indices = @transform_7, window_bounds = array<i64: 64, 128>}, {pipeline_mode = #tpu.pipeline_mode<synchronous>, transform_indices = @transform_8, window_bounds = array<i64: 1, 128>}, {transform_indices = @transform_9, window_bounds = array<i64: 8, 128>}]} {
    %c0 = arith.constant 0 : index
    %c0_0 = arith.constant 0 : index
    %0 = vector.load %arg1[%c0, %c0_0] : memref<8x128xf32, #tpu.memory_space<vmem>>, vector<8x128xf32>
    %c0_1 = arith.constant 0 : index
    %c0_2 = arith.constant 0 : index
    %1 = vector.load %arg2[%c0_1, %c0_2] : memref<128x64xf32, #tpu.memory_space<vmem>>, vector<128x64xf32>
    %cst = arith.constant dense<0.000000e+00> : vector<8x64xf32>
    %2 = tpu.matmul %0, %1, %cst {dimension_numbers = #tpu.dot_dimension_numbers<[1], [0], [0], [1], [0, 0, 1, 1], [], []>} : vector<8x128xf32>, vector<128x64xf32>, vector<8x64xf32> -> vector<8x64xf32>
    %c0_3 = arith.constant 0 : index
    %c0_4 = arith.constant 0 : index
    %3 = vector.load %arg3[%c0_3, %c0_4] : memref<1x64xf32, #tpu.memory_space<vmem>>, vector<1x64xf32>
    %4 = vector.broadcast %3 : vector<1x64xf32> to vector<8x64xf32>
    %5 = arith.addf %2, %4 : vector<8x64xf32>
    %cst_5 = arith.constant 0.000000e+00 : f32
    %6 = vector.broadcast %cst_5 : f32 to vector<8x64xf32>
    %7 = arith.maximumf %5, %6 : vector<8x64xf32>
    %c0_6 = arith.constant 0 : index
    %c0_7 = arith.constant 0 : index
    %8 = vector.load %arg4[%c0_6, %c0_7] : memref<64x32xf32, #tpu.memory_space<vmem>>, vector<64x32xf32>
    %cst_8 = arith.constant dense<0.000000e+00> : vector<8x32xf32>
    %9 = tpu.matmul %7, %8, %cst_8 {dimension_numbers = #tpu.dot_dimension_numbers<[1], [0], [0], [1], [0, 0, 1, 1], [], []>} : vector<8x64xf32>, vector<64x32xf32>, vector<8x32xf32> -> vector<8x32xf32>
    %c0_9 = arith.constant 0 : index
    %c0_10 = arith.constant 0 : index
    %10 = vector.load %arg5[%c0_9, %c0_10] : memref<1x32xf32, #tpu.memory_space<vmem>>, vector<1x32xf32>
    %11 = vector.broadcast %10 : vector<1x32xf32> to vector<8x32xf32>
    %12 = arith.addf %9, %11 : vector<8x32xf32>
    %c0_11 = arith.constant 0 : index
    %c0_12 = arith.constant 0 : index
    %13 = vector.load %arg6[%c0_11, %c0_12] : memref<32x64xf32, #tpu.memory_space<vmem>>, vector<32x64xf32>
    %cst_13 = arith.constant dense<0.000000e+00> : vector<8x64xf32>
    %14 = tpu.matmul %12, %13, %cst_13 {dimension_numbers = #tpu.dot_dimension_numbers<[1], [0], [0], [1], [0, 0, 1, 1], [], []>} : vector<8x32xf32>, vector<32x64xf32>, vector<8x64xf32> -> vector<8x64xf32>
    %c0_14 = arith.constant 0 : index
    %c0_15 = arith.constant 0 : index
    %15 = vector.load %arg7[%c0_14, %c0_15] : memref<1x64xf32, #tpu.memory_space<vmem>>, vector<1x64xf32>
    %16 = vector.broadcast %15 : vector<1x64xf32> to vector<8x64xf32>
    %17 = arith.addf %14, %16 : vector<8x64xf32>
    %cst_16 = arith.constant 0.000000e+00 : f32
    %18 = vector.broadcast %cst_16 : f32 to vector<8x64xf32>
    %19 = arith.maximumf %17, %18 : vector<8x64xf32>
    %c0_17 = arith.constant 0 : index
    %c0_18 = arith.constant 0 : index
    %20 = vector.load %arg8[%c0_17, %c0_18] : memref<64x128xf32, #tpu.memory_space<vmem>>, vector<64x128xf32>
    %cst_19 = arith.constant dense<0.000000e+00> : vector<8x128xf32>
    %21 = tpu.matmul %19, %20, %cst_19 {dimension_numbers = #tpu.dot_dimension_numbers<[1], [0], [0], [1], [0, 0, 1, 1], [], []>} : vector<8x64xf32>, vector<64x128xf32>, vector<8x128xf32> -> vector<8x128xf32>
    %c0_20 = arith.constant 0 : index
    %c0_21 = arith.constant 0 : index
    %22 = vector.load %arg9[%c0_20, %c0_21] : memref<1x128xf32, #tpu.memory_space<vmem>>, vector<1x128xf32>
    %23 = vector.broadcast %22 : vector<1x128xf32> to vector<8x128xf32>
    %24 = arith.addf %21, %23 : vector<8x128xf32>
    %c0_22 = arith.constant 0 : index
    %c0_23 = arith.constant 0 : index
    %25 = vector.load %arg10[%c0_22, %c0_23] : memref<8x128xf32, #tpu.memory_space<vmem>>, vector<8x128xf32>
    tpu.vector_store %arg10[%c0_22, %c0_23], %24 {strides = array<i32>} : memref<8x128xf32, #tpu.memory_space<vmem>>, vector<8x128xf32>,
    return
  }
  func.func @transform_0(%arg0: i32) -> (i32, i32) {
    %c0_i32 = arith.constant 0 : i32
    %c0_i32_0 = arith.constant 0 : i32
    return %arg0, %c0_i32 : i32, i32
  }
  func.func @transform_1(%arg0: i32) -> (i32, i32) {
    %c0_i32 = arith.constant 0 : i32
    %c0_i32_0 = arith.constant 0 : i32
    %c0_i32_1 = arith.constant 0 : i32
    return %c0_i32, %c0_i32_0 : i32, i32
  }
  func.func @transform_2(%arg0: i32) -> (i32, i32) {
    %c0_i32 = arith.constant 0 : i32
    %c0_i32_0 = arith.constant 0 : i32
    %c0_i32_1 = arith.constant 0 : i32
    return %c0_i32, %c0_i32_0 : i32, i32
  }
  func.func @transform_3(%arg0: i32) -> (i32, i32) {
    %c0_i32 = arith.constant 0 : i32
    %c0_i32_0 = arith.constant 0 : i32
    %c0_i32_1 = arith.constant 0 : i32
    return %c0_i32, %c0_i32_0 : i32, i32
  }
  func.func @transform_4(%arg0: i32) -> (i32, i32) {
    %c0_i32 = arith.constant 0 : i32
    %c0_i32_0 = arith.constant 0 : i32
    %c0_i32_1 = arith.constant 0 : i32
    return %c0_i32, %c0_i32_0 : i32, i32
  }
  func.func @transform_5(%arg0: i32) -> (i32, i32) {
    %c0_i32 = arith.constant 0 : i32
    %c0_i32_0 = arith.constant 0 : i32
    %c0_i32_1 = arith.constant 0 : i32
    return %c0_i32, %c0_i32_0 : i32, i32
  }
  func.func @transform_6(%arg0: i32) -> (i32, i32) {
    %c0_i32 = arith.constant 0 : i32
    %c0_i32_0 = arith.constant 0 : i32
    %c0_i32_1 = arith.constant 0 : i32
    return %c0_i32, %c0_i32_0 : i32, i32
  }
  func.func @transform_7(%arg0: i32) -> (i32, i32) {
    %c0_i32 = arith.constant 0 : i32
    %c0_i32_0 = arith.constant 0 : i32
    %c0_i32_1 = arith.constant 0 : i32
    return %c0_i32, %c0_i32_0 : i32, i32
  }
  func.func @transform_8(%arg0: i32) -> (i32, i32) {
    %c0_i32 = arith.constant 0 : i32
    %c0_i32_0 = arith.constant 0 : i32
    %c0_i32_1 = arith.constant 0 : i32
    return %c0_i32, %c0_i32_0 : i32, i32
  }
  func.func @transform_9(%arg0: i32) -> (i32, i32) {
    %c0_i32 = arith.constant 0 : i32
    %c0_i32_0 = arith.constant 0 : i32
    return %arg0, %c0_i32 : i32, i32
  }
}

</mosaic_0001>

<bundles_post_ra>
// kernel: tpu_custom_call.1
= control target key start
LH: loop header
LB: loop body
LE: loop exit
PB: predicated region body
PF: predicated region fallthrough
CT: control target
= control target key end

     0   :  { %v619_v3 = vmov 0.0|0.0   ;;  %vm620_vm0 = vmmov 0   ;;  %v621_v6 = vmov 0.0   ;;  %s836_s0 = inlined_call_operand.vmem [shape: f32[8,128], index: 0, kind: input, shape index: {}]   ;;  %s837_s1 = inlined_call_operand.vmem [shape: f32[128,64], index: 1, kind: input, shape index: {}]   ;;  %s838_s2 = inlined_call_operand.vmem [shape: f32[1,64], index: 2, kind: input, shape index: {}]   ;;  %s839_s3 = inlined_call_operand.vmem [shape: f32[64,32], index: 3, kind: input, shape index: {}]   ;;  %s840_s4 = inlined_call_operand.vmem [shape: f32[1,32], index: 4, kind: input, shape index: {}]   ;;  %s841_s5 = inlined_call_operand.vmem [shape: f32[32,64], index: 5, kind: input, shape index: {}]   ;;  %s842_s6 = inlined_call_operand.vmem [shape: f32[1,64], index: 6, kind: input, shape index: {}]   ;;  %s843_s7 = inlined_call_operand.vmem [shape: f32[64,128], index: 7, kind: input, shape index: {}]   ;;  %s844_s8 = inlined_call_operand.vmem [shape: f32[1,128], index: 8, kind: input, shape index: {}]   ;;  %s845_s9 = inlined_call_operand.hbm [shape: f32[8,128], index: 9, kind: output, shape index: {}]  }
   0x1   :  { %v34_v0 = vld [vmem:[%s837_s1] sm:$0xff]  ;;  %v35_v1 = vld [vmem:[%s837_s1 + $0x8] sm:$0xff]  ;;  %v36_v2 = vld [vmem:[%s837_s1 + $0x10] sm:$0xff]  ;;  %537 = vmatprep.subr.bf16.mxu0 %v619_v3  ;;  %485 = vmatprep.mubr.msk.f32.mxu0 %vm620_vm0, %v621_v6 }
   0x2   :  { %v538_v4 = vpack.c.bf16 %v35_v1, %v34_v0  ;;  %v37_v5 = vld [vmem:[%s837_s1 + $0x18] sm:$0xff]  ;;  %561 = vmatprep.subr.bf16.mxu1 %v619_v3  ;;  %504 = vmatprep.mubr.msk.f32.mxu1 %vm620_vm0, %v621_v6  ;;  %v38_v8 = vld [vmem:[%s837_s1 + $0x20] sm:$0xff]  ;;  %v39_v9 = vld [vmem:[%s837_s1 + $0x28] sm:$0xff] }
   0x3   :  { %v541_v7 = vpack.c.bf16 %v37_v5, %v36_v2  ;;  %v128_v10 = vld [vmem:[%s839_s3] sm:$0xff]  ;;  %v129_v11 = vld [vmem:[%s839_s3 + $0x8] sm:$0xff]  ;;  %v130_v12 = vld [vmem:[%s839_s3 + $0x10] sm:$0xff]  ;;  %v544_v14 = vpack.c.bf16 %v39_v9, %v38_v8 }
   0x4   :  { %539 = vmatpush3.bf16.msra.mxu0 %v538_v4  ;;  %v131_v13 = vld [vmem:[%s839_s3 + $0x18] sm:$0xff]  ;;  %v562_v15 = vpack.c.bf16 %v129_v11, %v128_v10  ;;  %v40_v16 = vld [vmem:[%s837_s1 + $0x30] sm:$0xff] }
   0x5   :  { %540 = vmatprep.subr.bf16.mxu0 %v619_v3  ;;  %v41_v17 = vld [vmem:[%s837_s1 + $0x38] sm:$0xff] }
   0x8   :  { %542 = vmatpush3.bf16.msra.mxu0 %v541_v7 }
   0x9   :  { %543 = vmatprep.subr.bf16.mxu0 %v619_v3 }
   0xa   :  { %14 = vsyncpa [#allocation3], 0  ;;  %563 = vmatpush3.bf16.msra.mxu1 %v562_v15  ;;  %v565_v18 = vpack.c.bf16 %v131_v13, %v130_v12  ;;  %v132_v19 = vld [vmem:[%s839_s3 + $0x20] sm:$0xff]  ;;  %v133_v20 = vld [vmem:[%s839_s3 + $0x28] sm:$0xff]  ;;  %v547_v21 = vpack.c.bf16 %v41_v17, %v40_v16  ;;  %vm143_vm1 = vcmask 523264   ;;  %vm228_vm2 = vcmask 261120  }
   0xb   :  { %564 = vmatprep.subr.bf16.mxu1 %v619_v3  ;;  %v42_v22 = vld [vmem:[%s837_s1 + $0x40] sm:$0xff]  ;;  %v43_v23 = vld [vmem:[%s837_s1 + $0x48] sm:$0xff]  ;;  %v568_v24 = vpack.c.bf16 %v133_v20, %v132_v19  ;;  %v44_v26 = vld [vmem:[%s837_s1 + $0x50] sm:$0xff]  ;;  %s622_s20 = smov [#allocation2]  }
   0xc   :  { %545 = vmatpush3.bf16.msra.mxu0 %v544_v14  ;;  %v550_v25 = vpack.c.bf16 %v43_v23, %v42_v22  ;;  %v45_v27 = vld [vmem:[%s837_s1 + $0x58] sm:$0xff]  ;;  %v46_v29 = vld [vmem:[%s837_s1 + $0x60] sm:$0xff]  ;;  %v47_v30 = vld [vmem:[%s837_s1 + $0x68] sm:$0xff] }
   0xd   :  { %546 = vmatprep.subr.bf16.mxu0 %v619_v3  ;;  %v553_v28 = vpack.c.bf16 %v45_v27, %v44_v26  ;;  %v556_v31 = vpack.c.bf16 %v47_v30, %v46_v29  ;;  %v48_v32 = vld [vmem:[%s837_s1 + $0x70] sm:$0xff]  ;;  %v49_v33 = vld [vmem:[%s837_s1 + $0x78] sm:$0xff]  ;;  %v33_v35 = vld [vmem:[%s836_s0] sm:$0xff] }
   0xe   :  { %566 = vmatpush3.bf16.msra.mxu1 %v565_v18  ;;  %v559_v34 = vpack.c.bf16 %v49_v33, %v48_v32  ;;  %v134_v36 = vld [vmem:[%s839_s3 + $0x30] sm:$0xff]  ;;  %v135_v37 = vld [vmem:[%s839_s3 + $0x38] sm:$0xff]  ;;  %v406_v39 = vld [vmem:[%s838_s2] ss:$0 sm:$0xff]  ;;  %s398_s2 = sshll.u32 %s622_s20, 4  ;;  %s399_s2 = int_to_ptr.vmem [resolvable:$true] %s398_s2 }
   0xf   :  { %567 = vmatprep.subr.bf16.mxu1 %v619_v3  ;;  %v571_v38 = vpack.c.bf16 %v135_v37, %v134_v36  ;;  %v217_v40 = vld [vmem:[%s841_s5] sm:$0xff]  ;;  %v218_v41 = vld [vmem:[%s841_s5 + $0x8] sm:$0xff]  ;;  %v219_v47 = vld [vmem:[%s841_s5 + $0x10] sm:$0xff]  ;;  %p600_p1 = scmp.lt.s32.totalorder %s399_s2, %s399_s2 }
  0x10   :  { %548 = vmatpush3.bf16.msra.mxu0 %v547_v21  ;;  %v574_v45 = vpack.c.bf16 %v218_v41, %v217_v40  ;;  %v220_v48 = vld [vmem:[%s841_s5 + $0x18] sm:$0xff]  ;;  %v303_v50 = vld [vmem:[%s843_s7] sm:$0xff]  ;;  %v304_v51 = vld [vmem:[%s843_s7 + $0x8] sm:$0xff] }
  0x11   :  { %549 = vmatprep.subr.bf16.mxu0 %v619_v3  ;;  %v577_v49 = vpack.c.bf16 %v220_v48, %v219_v47  ;;  %v407_v52 = vld [vmem:[%s840_s4] ss:$0 sm:$0xff]  ;;  %v580_v54 = vpack.c.bf16 %v304_v51, %v303_v50  ;;  %v305_v57 = vld [vmem:[%s843_s7 + $0x10] sm:$0xff]  ;;  %v306_v58 = vld [vmem:[%s843_s7 + $0x18] sm:$0xff] }
  0x12   :  { %569 = vmatpush3.bf16.msra.mxu1 %v568_v24  ;;  %v583_v59 = vpack.c.bf16 %v306_v58, %v305_v57  ;;  %v307_v60 = vld [vmem:[%s843_s7 + $0x20] sm:$0xff]  ;;  %v308_v61 = vld [vmem:[%s843_s7 + $0x28] sm:$0xff]  ;;  %v309_v63 = vld [vmem:[%s843_s7 + $0x30] sm:$0xff] }
  0x13   :  { %570 = vmatprep.subr.bf16.mxu1 %v619_v3  ;;  %v586_v62 = vpack.c.bf16 %v308_v61, %v307_v60  ;;  %v310_v0 = vld [vmem:[%s843_s7 + $0x38] sm:$0xff]  ;;  %v409_v2 = vld [vmem:[%s842_s6] ss:$0 sm:$0xff]  ;;  %s595_s7 = scalar_lea.vmem %s399_s2, 128 }
  0x14   :  { %551 = vmatpush3.bf16.msra.mxu0 %v550_v25  ;;  %v589_v1 = vpack.c.bf16 %v310_v0, %v309_v63  ;;  %p596_p0 = scmp.ne.s32.totalorder %s399_s2, %s595_s7  ;;  %p601_p2 = scmp.lt.s32.totalorder %s595_s7, %s595_s7 }
  0x15   :  { %552 = vmatprep.subr.bf16.mxu0 %v619_v3 }
  0x16   :  { %572 = vmatpush3.bf16.msra.mxu1 %v571_v38  ;;  %p602_p3 = por %p601_p2, %p600_p1 }
  0x17   :  { %573 = vmatprep.subr.bf16.mxu1 %v619_v3 }
  0x18   :  { %554 = vmatpush3.bf16.msra.mxu0 %v553_v28  ;;  %p603_p4 = pnand %p602_p3, %p596_p0 }
  0x19   :  { %555 = vmatprep.subr.bf16.mxu0 %v619_v3 }
  0x1c   :  { %557 = vmatpush3.bf16.msra.mxu0 %v556_v31 }
  0x1d   :  { %558 = vmatprep.subr.bf16.mxu0 %v619_v3 }
  0x20   :  { %560 = vmatpush3.bf16.msra.mxu0 %v559_v34 }
  0x23   :  { %486 = vmatmul.mubr.f32.vlgmr.msra.gmra.mrb[0].mxu0 %v33_v35 }
  0xf6   :  { %v123_v42 = vpop.f32.mrb[0].mxu0 }
  0xf7   :  { %v124_v43 = vadd.f32 %v406_v39, %v123_v42  ;;  %v487_v44 = vpop.f32.mrb[1].mxu0 }
  0xf9   :  { %v127_v46 = vmax.f32 %v124_v43, 0.0 }
  0xfb   :  { %505 = vmatmul.mubr.msk.f32.vlgmr.msra.gmra.mrb[0].mxu1 %vm143_vm1, %v127_v46 }
  0xfc   :  { %575 = vmatpush3.bf16.msra.mxu1 %v574_v45  ;;  %515 = vmatprep.mubr.msk.f32.mxu1 %vm620_vm0, %v621_v6 }
  0xfd   :  { %576 = vmatprep.subr.bf16.mxu1 %v619_v3 }
 0x100   :  { %578 = vmatpush3.bf16.msra.mxu1 %v577_v49 }
 0x101   :  { %579 = vmatprep.subr.bf16.mxu1 %v619_v3 }
 0x1ce   :  { %v213_v53 = vpop.f32.mrb[0].mxu1 }
 0x1cf   :  { %v214_v55 = vadd.f32 %v407_v52, %v213_v53  ;;  %v506_v56 = vpop.f32.mrb[1].mxu1 }
 0x1d1   :  { %516 = vmatmul.mubr.msk.f32.vlgmr.msra.gmra.mrb[2].mxu1 %vm228_vm2, %v214_v55 }
 0x1d2   :  { %581 = vmatpush3.bf16.msra.mxu1 %v580_v54  ;;  %534 = vmatprep.mubr.msk.f32.mxu1 %vm620_vm0, %v621_v6 }
 0x1d3   :  { %582 = vmatprep.subr.bf16.mxu1 %v619_v3 }
 0x1d6   :  { %584 = vmatpush3.bf16.msra.mxu1 %v583_v59 }
 0x1d7   :  { %585 = vmatprep.subr.bf16.mxu1 %v619_v3 }
 0x1da   :  { %587 = vmatpush3.bf16.msra.mxu1 %v586_v62 }
 0x1db   :  { %588 = vmatprep.subr.bf16.mxu1 %v619_v3  ;;  %v411_v3 = vld [vmem:[%s844_s8] ss:$0 sm:$0xff] }
 0x1de   :  { %590 = vmatpush3.bf16.msra.mxu1 %v589_v1 }
 0x2a4   :  { %v298_v4 = vpop.f32.mrb[2].mxu1 }
 0x2a5   :  { %v299_v5 = vadd.f32 %v409_v2, %v298_v4  ;;  %v517_v6 = vpop.f32.mrb[3].mxu1 }
 0x2a7   :  { %v302_v7 = vmax.f32 %v299_v5, 0.0 }
 0x2a9   :  { %535 = vmatmul.mubr.msk.f32.vlgmr.msra.gmra.mrb[4].mxu1 %vm143_vm1, %v302_v7 }
 0x37c   :  { %v387_v8 = vpop.f32.mrb[4].mxu1 }
 0x37d   :  { %v388_v9 = vadd.f32 %v411_v3, %v387_v8  ;;  %v536_v10 = vpop.f32.mrb[5].mxu1 }
 0x37f   :  { %391 = vst [vmem:[#allocation2] sm:$0xff] %v388_v9 }
 0x380   :  { %606 = shalt.err (!%p603_p4)
}
 0x381   :  { %s607_s21 = scalar_lea.hbm %s845_s9, 128 }
 0x382   :  { %p608_p5 = scmp.ne.s32.totalorder %s845_s9, %s607_s21  ;;  %p611_p6 = scmp.lt.u32.totalorder %s607_s21, %s845_s9 }
 0x384   :  { %p613_p7 = pnand %p611_p6, %p608_p5 }
 0x386   :  { %616 = shalt.err (!%p613_p7)
}
 0x387   :  { %401 = dma.vmem_to_hbm [thread:$0]  %s399_s2, 128, %s845_s9, [#allocation3]  }
 0x388   :  { %617 = dma.done.wait [#allocation3], 128  }
 0x389   :  { %618 = vsyncadd [#allocation3], 4294967168 }
 0x38a   :  { %405 = vsyncpa [#allocation3], 1 }

</bundles_post_ra>
